<compile_context>
chip_gen: v5e
topology: v5e:2x2
jax: 0.10.0
libtpu: 0.0.40
codegen_flags: <defaults>
</compile_context>

<pallas_src>
import jax
import jax.numpy as jnp
from jax.experimental import pallas as pl
from jax.experimental.pallas import tpu as pltpu

_LANE = 128
_BLOCK_BUDGET_BYTES = 12 * 1024 * 1024   # single-copy per-grid-step block budget
_MIN_BLOCK_BYTES = 1 * 1024 * 1024       # aim for >= ~1 MiB blocks when possible


def _build_kernel(meta):
    """meta: static tuple of (is_seq, chan_offset, chan_size) per input."""

    def kernel(*refs):
        in_refs = refs[:-1]
        o_ref = refs[-1]                                   # (b_tile, c_total, hw_tile)
        for ref, (is_seq, off, c) in zip(in_refs, meta):
            if is_seq:
                # (T, b_tile, c, hw_tile): mean over the leading T axis. T is a
                # leading (non-lane) axis, so this is pure VPU adds (no XLU), and
                # the 1/T scale is folded into the single mean — no finalize pass.
                slab = jnp.mean(ref[...].astype(jnp.float32), axis=0)
            else:
                slab = ref[...]
            # NOTE: real YOLO channel counts (64/128/256...) keep `off` sublane
            # aligned; small unaligned offsets fall back to masked stores (correct,
            # just slower on toy channel counts like c=4).
            o_ref[:, off:off + c, :] = slab.astype(o_ref.dtype)

    return kernel


def _divisors(n):
    return [d for d in range(1, n + 1) if n % d == 0]


def ms_concat(xs, dimension=1):
    """Pallas implementation of MS_Concat.forward.

    xs: list of arrays, each either (B, C_i, H, W) or (T, B, C_i, H, W).
    Returns (B, sum(C_i), H, W) in the inputs' (promoted) dtype.
    """
    if dimension != 1:
        # TODO(synk): only channel concat (dimension=1) is implemented.
        raise NotImplementedError("MS_Concat Pallas kernel only supports dimension=1")
    assert len(xs) >= 1

    shapes4 = [(x.shape[-4], x.shape[-3], x.shape[-2], x.shape[-1]) for x in xs]
    B, _, H, W = shapes4[0]
    for (b, _c, h, w) in shapes4:
        assert (b, h, w) == (B, H, W), "all inputs must share (B, H, W)"

    t_list = [x.shape[0] for x in xs if x.ndim == 5]
    assert all(t == t_list[0] for t in t_list), \
        "all 5-D inputs must share the same number of time steps"
    T = t_list[0] if t_list else 1
    # TODO(synk): very large T (>>16) would need an extra T-chunk grid axis; spikformer T is 4-8.

    HW = H * W
    c_sizes = [s[1] for s in shapes4]
    c_total = sum(c_sizes)
    c_offs = [sum(c_sizes[:i]) for i in range(len(c_sizes))]
    meta = tuple((x.ndim == 5, off, c) for x, off, c in zip(xs, c_offs, c_sizes))

    # Output dtype follows torch.cat / torch.mean dtype-preserving semantics.
    out_dtype = jnp.result_type(*[x.dtype for x in xs])
    out_itemsize = jnp.dtype(out_dtype).itemsize

    def block_bytes(b_tile, hw_tile):
        n = b_tile * c_total * hw_tile * out_itemsize               # output block
        for x, c in zip(xs, c_sizes):
            t = T if x.ndim == 5 else 1
            n += t * b_tile * c * hw_tile * jnp.dtype(x.dtype).itemsize
        return n

    # ---- spatial (lane) tiling: largest multiple of 128 dividing HW that keeps the
    # per-step block footprint inside the budget (v7x has only 64 MiB physical VMEM).
    if HW % _LANE == 0:
        hw_cands = [m * _LANE for m in range(HW // _LANE, 0, -1) if HW % (m * _LANE) == 0]
    else:
        hw_cands = [HW]                    # full-extent last-dim block is always legal
    hw_tile = hw_cands[-1]
    for cand in hw_cands:                  # largest first
        if block_bytes(1, cand) <= _BLOCK_BUDGET_BYTES:
            hw_tile = cand
            break

    # ---- batch tiling: pack several batch elements per step when blocks are tiny,
    # but keep >= 2 grid steps whenever possible (v7x megacore sharding).
    b_tile = 1
    for cand in _divisors(B):
        if cand == 1:
            continue
        if block_bytes(b_tile, hw_tile) >= _MIN_BLOCK_BYTES:
            break
        if block_bytes(cand, hw_tile) > _BLOCK_BUDGET_BYTES:
            break
        steps_before = (B // b_tile) * (HW // hw_tile)
        steps_after = (B // cand) * (HW // hw_tile)
        if steps_after < 2 and steps_before >= 2:
            break
        b_tile = cand

    grid = (B // b_tile, HW // hw_tile)

    # ---- flatten spatial dims -> lane-dense last dim; keep native dtypes
    # (no wrapper-side f32 cast: that would add a full extra HBM pass).
    flat_inputs = []
    in_specs = []
    for x, c in zip(xs, c_sizes):
        if x.ndim == 5:
            flat_inputs.append(x.reshape(T, B, c, HW))
            in_specs.append(
                pl.BlockSpec((T, b_tile, c, hw_tile), lambda b, h: (0, b, 0, h)))
        else:
            flat_inputs.append(x.reshape(B, c, HW))
            in_specs.append(
                pl.BlockSpec((b_tile, c, hw_tile), lambda b, h: (b, 0, h)))

    # Double-buffered pipeline needs ~2x the block footprint; cap at 48 MiB so we
    # leave headroom inside v7x's 64 MiB per-core VMEM (v5e/v6e have 128 MiB).
    block_sz = block_bytes(b_tile, hw_tile)
    vmem_limit = min(max(2 * block_sz + (4 << 20), 16 << 20), 48 << 20)

    out = pl.pallas_call(
        _build_kernel(meta),
        out_shape=jax.ShapeDtypeStruct((B, c_total, HW), out_dtype),
        grid_spec=pltpu.PrefetchScalarGridSpec(
            num_scalar_prefetch=0,
            grid=grid,
            in_specs=in_specs,
            out_specs=pl.BlockSpec((b_tile, c_total, hw_tile), lambda b, h: (b, 0, h)),
        ),
        compiler_params=pltpu.CompilerParams(
            dimension_semantics=("parallel", "parallel"),
            vmem_limit_bytes=vmem_limit,
        ),
    )(*flat_inputs)

    return out.reshape(B, c_total, H, W)


# ----------------------- pure-JAX reference for verification -----------------------
def _reference(xs, dimension=1):
    ys = [x.mean(axis=0) if x.ndim == 5 else x for x in xs]
    return jnp.concatenate(ys, axis=dimension)


if __name__ == "__main__":
    key = jax.random.PRNGKey(0)
    k0, k1, k2 = jax.random.split(key, 3)

    T, B, H, W = 4, 2, 16, 16
    x0 = jax.random.normal(k0, (T, B, 4, H, W), jnp.float32)   # 5-D: mean over T
    x1 = jax.random.normal(k1, (B, 8, H, W), jnp.float32)      # 4-D: passed through
    x2 = jax.random.normal(k2, (T, B, 4, H, W), jnp.float32)   # 5-D: mean over T

    out = ms_concat([x0, x1, x2])
    out = jax.block_until_ready(out)

    ref = jax.block_until_ready(_reference([x0, x1, x2]))
    assert out.shape == ref.shape == (B, 16, H, W) and out.dtype == ref.dtype
    err = jnp.max(jnp.abs(out - ref))
    if not bool(err < 1e-5):
        raise AssertionError(f"Pallas MS_Concat mismatch vs reference, max abs err = {err}")

    print("KERNEL_OK")
</pallas_src>

<mosaic_0001>
module attributes {stable_mosaic.version = 11 : i64} {
  func.func @kernel(%arg0: i32, %arg1: i32, %arg2: memref<4x1x4x256xf32, #tpu.memory_space<vmem>>, %arg3: memref<1x8x256xf32, #tpu.memory_space<vmem>>, %arg4: memref<4x1x4x256xf32, #tpu.memory_space<vmem>>, %arg5: memref<1x16x256xf32, #tpu.memory_space<vmem>>) attributes {dimension_semantics = [#tpu.dimension_semantics<parallel>, #tpu.dimension_semantics<parallel>], iteration_bounds = array<i64: 2, 1>, scalar_prefetch = 0 : i64, scratch_operands = 0 : i64, tpu.core_type = #tpu.core_type<tc>, window_params = [{transform_indices = @transform_0, window_bounds = array<i64: 4, 1, 4, 256>}, {transform_indices = @transform_1, window_bounds = array<i64: 1, 8, 256>}, {transform_indices = @transform_2, window_bounds = array<i64: 4, 1, 4, 256>}, {transform_indices = @transform_3, window_bounds = array<i64: 1, 16, 256>}]} {
    %c0 = arith.constant 0 : index
    %c0_0 = arith.constant 0 : index
    %c0_1 = arith.constant 0 : index
    %c0_2 = arith.constant 0 : index
    %0 = vector.load %arg2[%c0, %c0_0, %c0_1, %c0_2] : memref<4x1x4x256xf32, #tpu.memory_space<vmem>>, vector<4x1x4x256xf32>
    %cst = arith.constant dense<0.000000e+00> : vector<1x4x256xf32>
    %1 = vector.multi_reduction <add>, %0, %cst [0] : vector<4x1x4x256xf32> to vector<1x4x256xf32>
    %cst_3 = arith.constant 4.000000e+00 : f32
    %2 = vector.broadcast %cst_3 : f32 to vector<1x4x256xf32>
    %3 = arith.divf %1, %2 : vector<1x4x256xf32>
    %c0_4 = arith.constant 0 : index
    %c0_5 = arith.constant 0 : index
    %c0_6 = arith.constant 0 : index
    %4 = vector.load %arg5[%c0_4, %c0_5, %c0_6] : memref<1x16x256xf32, #tpu.memory_space<vmem>>, vector<1x4x256xf32>
    tpu.vector_store %arg5[%c0_4, %c0_5, %c0_6], %3 {strides = array<i32>} : memref<1x16x256xf32, #tpu.memory_space<vmem>>, vector<1x4x256xf32>,
    %c0_7 = arith.constant 0 : index
    %c0_8 = arith.constant 0 : index
    %c0_9 = arith.constant 0 : index
    %5 = vector.load %arg3[%c0_7, %c0_8, %c0_9] : memref<1x8x256xf32, #tpu.memory_space<vmem>>, vector<1x8x256xf32>
    %c0_10 = arith.constant 0 : index
    %c4 = arith.constant 4 : index
    %c0_11 = arith.constant 0 : index
    %6 = vector.load %arg5[%c0_10, %c4, %c0_11] : memref<1x16x256xf32, #tpu.memory_space<vmem>>, vector<1x8x256xf32>
    tpu.vector_store %arg5[%c0_10, %c4, %c0_11], %5 {strides = array<i32>} : memref<1x16x256xf32, #tpu.memory_space<vmem>>, vector<1x8x256xf32>,
    %c0_12 = arith.constant 0 : index
    %c0_13 = arith.constant 0 : index
    %c0_14 = arith.constant 0 : index
    %c0_15 = arith.constant 0 : index
    %7 = vector.load %arg4[%c0_12, %c0_13, %c0_14, %c0_15] : memref<4x1x4x256xf32, #tpu.memory_space<vmem>>, vector<4x1x4x256xf32>
    %cst_16 = arith.constant dense<0.000000e+00> : vector<1x4x256xf32>
    %8 = vector.multi_reduction <add>, %7, %cst_16 [0] : vector<4x1x4x256xf32> to vector<1x4x256xf32>
    %cst_17 = arith.constant 4.000000e+00 : f32
    %9 = vector.broadcast %cst_17 : f32 to vector<1x4x256xf32>
    %10 = arith.divf %8, %9 : vector<1x4x256xf32>
    %c0_18 = arith.constant 0 : index
    %c12 = arith.constant 12 : index
    %c0_19 = arith.constant 0 : index
    %11 = vector.load %arg5[%c0_18, %c12, %c0_19] : memref<1x16x256xf32, #tpu.memory_space<vmem>>, vector<1x4x256xf32>
    tpu.vector_store %arg5[%c0_18, %c12, %c0_19], %10 {strides = array<i32>} : memref<1x16x256xf32, #tpu.memory_space<vmem>>, vector<1x4x256xf32>,
    return
  }
  func.func @transform_0(%arg0: i32, %arg1: i32) -> (i32, i32, i32, i32) {
    %c0_i32 = arith.constant 0 : i32
    %c0_i32_0 = arith.constant 0 : i32
    %c0_i32_1 = arith.constant 0 : i32
    return %c0_i32, %arg0, %c0_i32_0, %arg1 : i32, i32, i32, i32
  }
  func.func @transform_1(%arg0: i32, %arg1: i32) -> (i32, i32, i32) {
    %c0_i32 = arith.constant 0 : i32
    %c0_i32_0 = arith.constant 0 : i32
    return %arg0, %c0_i32, %arg1 : i32, i32, i32
  }
  func.func @transform_2(%arg0: i32, %arg1: i32) -> (i32, i32, i32, i32) {
    %c0_i32 = arith.constant 0 : i32
    %c0_i32_0 = arith.constant 0 : i32
    %c0_i32_1 = arith.constant 0 : i32
    return %c0_i32, %arg0, %c0_i32_0, %arg1 : i32, i32, i32, i32
  }
  func.func @transform_3(%arg0: i32, %arg1: i32) -> (i32, i32, i32) {
    %c0_i32 = arith.constant 0 : i32
    %c0_i32_0 = arith.constant 0 : i32
    return %arg0, %c0_i32, %arg1 : i32, i32, i32
  }
}

</mosaic_0001>

<bundles_post_ra>
// kernel: tpu_custom_call.1
= control target key start
LH: loop header
LB: loop body
LE: loop exit
PB: predicated region body
PF: predicated region fallthrough
CT: control target
= control target key end

     0   :  { %8 = vsyncpa [#allocation3], 0  ;;  %s1077_s0 = inlined_call_operand.hbm [shape: f32[4,2,4,256], index: 0, kind: input, shape index: {}]   ;;  %s1078_s1 = inlined_call_operand.hbm [shape: f32[2,8,256], index: 1, kind: input, shape index: {}]   ;;  %s1079_s2 = inlined_call_operand.hbm [shape: f32[4,2,4,256], index: 2, kind: input, shape index: {}]   ;;  %s1080_s3 = inlined_call_operand.hbm [shape: f32[2,16,256], index: 3, kind: output, shape index: {}]  }
   0x1   :  { %10 = vsyncpa [#allocation3 + $0x1], 0 }
   0x2   :  { %11 = vsyncpa [#allocation6], 0 }
   0x3   :  { %13 = vsyncpa [#allocation6 + $0x1], 0 }
   0x4   :  { %14 = vsyncpa [#allocation4], 0 }
   0x5   :  { %16 = vsyncpa [#allocation4 + $0x1], 0  ;;  %s889_s12 = smov 0   ;;  %s891_s13 = smov 0  }
   0x6   :  { %s893_s14 = smov 0   ;;  %s895_s15 = smov 0  }
   0x7   :  { %s897_s16 = smov 0   ;;  %s899_s17 = smov 0  }
   0x8 LB: > { %1084 = sst [smem:[#allocation12_spill]] %s849_s14  ;;  %s920_s18 = sadd.s32 4294967295, %s861_s17   ;;  %s861_s17 = sphi %s899_s17, %s22_s17   ;;  %s857_s16 = sphi %s897_s16, %s1096_s16   ;;  %s853_s15 = sphi %s895_s15, %s1095_s15   ;;  %s849_s14 = sphi %s893_s14, %s1094_s14   ;;  %s845_s13 = sphi %s891_s13, %s1098_s13   ;;  %s841_s12 = sphi %s889_s12, %s1097_s12  }
   0x9   : > { %1085 = sst [smem:[#allocation13_spill]] %s857_s16  ;;  %s579_s19 = sadd.s32 4294967294, %s861_s17  }
   0xa   : > { %s34_s20 = sadd.s32 1, %s857_s16  ;;  %s43_s21 = sadd.s32 1, %s849_s14 }
   0xb   : > { %p36_p0 = scmp.ge.s32.totalorder %s34_s20, 2  ;;  %p50_p1 = scmp.ne.s32.totalorder %s849_s14, %s845_s13 }
   0xc   : > { %p51_p2 = scmp.eq.s32.totalorder %s861_s17, 0  ;;  %p56_p3 = scmp.ne.s32.totalorder %s845_s13, %s841_s12 }
   0xd   : > { %s1100_s20 = smov (%p36_p0, %s34_s20), 0  ;;  %p57_p5 = scmp.eq.s32.totalorder %s920_s18, 0 }
   0xe   : > { %1086 = sst [smem:[#allocation14_spill]] %s1100_s20  ;;  %p932_p4 = por %p51_p2, %p50_p1 }
   0xf   : > { %s38_s23 = ssub.s32 %s857_s16, %s1100_s20  ;;  %p138_p6 = scmp.eq.s32.totalorder %s920_s18, 1 }
  0x10   : > { %p41_p7 = scmp.eq.s32.totalorder %s38_s23, 0  ;;  %p940_p8 = por %p57_p5, %p56_p3 }
  0x11   : > { %p944_p9 = por %p138_p6, %p50_p1  ;;  %p144_p10 = scmp.eq.s32.totalorder %s579_s19, 1 }
  0x12   : > { %s949_s26 = scalar_select %p41_p7, %s849_s14, %s43_s21  }
  0x13   : > { %p951_p11 = por %p144_p10, %p56_p3  ;;  %p581_p12 = scmp.ge.s32.totalorder %s861_s17, 2 }
  0x14   : > { %1090 = sst [smem:[#allocation15_spill]] %s949_s26  ;;  %p627_p13 = scmp.lt.s32.totalorder %s861_s17, 2 }
  0x15   : > { %s958_s28 = sand.u32 1, %s849_s14   ;;  %s601_s30 = sshll.u32 %s857_s16, 3 }
  0x16   : > { %s582_s29 = sshll.u32 %s958_s28, 5  ;;  %p964_p0 = pnand %p627_p13, %p932_p4 }
  0x17   : > { %s168_s4 = scalar_lea.vmem [#allocation2], %s582_s29  ;;  %s188_s7 = sand.u32 1, %s861_s17  }
  0x18   : > { %s178_s5 = sshll.u32 %s168_s4, 4  ;;  %s585_s8 = sshll.u32 %s958_s28, 4  ;;  %s968_s5 = int_to_ptr.vmem [resolvable:$true] %s178_s5 }
  0x19   : > { %s602_s9 = sshll.u32 %s857_s16, 4  ;;  %s192_s23 = scalar_lea.vmem [#allocation5], %s585_s8 }
  0x1a   : > { %s199_s19 = scalar_lea.hbm %s1078_s1, %s602_s9  ;;  %s203_s4 = sshll.u32 %s192_s23, 4  ;;  %s204_s4 = int_to_ptr.vmem [resolvable:$true] %s203_s4 }
  0x1b   : > { %s201_s21 = sshll.u32 %s199_s19, 4  ;;  %s189_s22 = scalar_lea.sflag [#allocation6], %s188_s7  ;;  %s202_s21 = int_to_ptr.hbm [resolvable:$true] %s201_s21 }
  0x1c   : > { %619 = dma.hbm_to_vmem [thread:$0]  (!%p964_p0), %s202_s21, 256, %s204_s4, %s189_s22  }
  0x1d   : > { %s221_s14 = scalar_lea.hbm %s1079_s2, %s601_s30  ;;  %s214_s10 = scalar_lea.vmem [#allocation7], %s582_s29 }
  0x1e   : > { %s222_s16 = sshll.u32 %s221_s14, 4  ;;  %s224_s11 = sshll.u32 %s214_s10, 4  ;;  %s223_s16 = int_to_ptr.hbm [resolvable:$true] %s222_s16  ;;  %s225_s11 = int_to_ptr.vmem [resolvable:$true] %s224_s11 }
  0x1f   : > { %p591_p1 = scmp.ge.s32.totalorder %s861_s17, 1  ;;  %p232_p2 = scmp.lt.s32.totalorder %s861_s17, 3 }
  0x20   : > { %s175_s7 = scalar_lea.hbm %s1077_s0, %s601_s30  ;;  %s165_s21 = scalar_lea.sflag [#allocation3], %s958_s28 }
  0x21   : > { %p233_p3 = pnand %p591_p1, %p232_p2  ;;  %s176_s19 = sshll.u32 %s175_s7, 4  ;;  %s177_s19 = int_to_ptr.hbm [resolvable:$true] %s176_s19 }
  0x22   : > { %s863_s20 = smov 256   ;;  %s864_s26 = smov 128  }
  0x23   : > { %s865_s23 = smov 8   ;;  %236 = sbr.rel (%p233_p3) target bundleno = 82 (0x52), region = 32 }
  0x24   : > { %616 = dma.hbm_to_vmem [thread:$0]  (!%p964_p0), %s177_s19, 512, %s968_s5, %s165_s21, %s863_s20, %s864_s26, %s865_s23  }
  0x25   : > { %622 = dma.hbm_to_vmem [thread:$0]  (!%p964_p0), %s223_s16, 512, %s225_s11, %s189_s22, %s863_s20, %s864_s26, %s865_s23  }
  0x26   : > { %s993_s14 = sand.u32 (!%p233_p3), 1, %s845_s13  }
  0x27   : > { %s996_s29 = sshll.u32 (!%p233_p3), %s993_s14, 5  ;;  %s239_s30 = scalar_lea.sflag (!%p233_p3), [#allocation3], %s993_s14 }
  0x28   : > { %s242_s4 = scalar_lea.vmem [#allocation2], %s996_s29 }
  0x29   : > { %828 = dma.done.wait (%p940_p8), %s239_s30, 512  }
  0x2a   : > { %830 = vsyncadd (%p940_p8), %s239_s30, 4294966784  ;;  %s248_s16 = sand.u32 1, %s920_s18   ;;  %s593_s28 = sshll.u32 %s993_s14, 4 }
  0x2b   : > { %s249_s5 = scalar_lea.sflag [#allocation6], %s248_s16  ;;  %s252_s6 = scalar_lea.vmem [#allocation5], %s593_s28 }
  0x2c   : > { %832 = dma.done.wait (%p940_p8), %s249_s5, 768  }
  0x2d   : > { %834 = vsyncadd (%p940_p8), %s249_s5, 4294966528  ;;  %v866_v0 = vmov 4.0   ;;  %v300_v2 = vld [vmem:[%s242_s4] sm:$0xff]  ;;  %v301_v3 = vld [vmem:[%s242_s4 + $0x8] sm:$0xff]  ;;  %s1011_s18 = scalar_lea.vmem [#allocation8], %s996_s29  ;;  %vm331_vm0 = vcmask 1043456  }
  0x2e   : > { %683 = vrcp.f32 %v866_v0  ;;  %v302_v4 = vld [vmem:[%s242_s4 + $0x10] sm:$0xff]  ;;  %308 = vst [vmem:[#allocation1] ss:$2 sm:$0xff] %v300_v2  ;;  %v303_v5 = vld [vmem:[%s242_s4 + $0x18] sm:$0xff]  ;;  %s262_s24 = scalar_lea.vmem [#allocation7], %s996_s29  ;;  %s604_s22 = sshll.u32 %s853_s15, 5 }
  0x2f   : > { %312 = vst [vmem:[#allocation1 + $0x10] ss:$2 sm:$0xff] %v301_v3  ;;  %v357_v7 = vld [vmem:[%s252_s6] sm:$0xff]  ;;  %v358_v10 = vld [vmem:[%s252_s6 + $0x8] sm:$0xff]  ;;  %s438_s11 = scalar_lea.hbm %s1080_s3, %s604_s22  ;;  %s439_s8 = sshll.u32 %s1011_s18, 4  ;;  %s440_s8 = int_to_ptr.vmem [resolvable:$true] %s439_s8 }
  0x30   : > { %316 = vst [vmem:[#allocation1 + $0x20] ss:$2 sm:$0xff] %v302_v4  ;;  %v361_v9 = vrot.slane %v357_v7, 4  ;;  %v362_v11 = vrot.slane %v358_v10, 4  ;;  %v369_v12 = vld [vmem:[%s262_s24] sm:$0xff]  ;;  %v370_v13 = vld [vmem:[%s262_s24 + $0x8] sm:$0xff] }
  0x31   : > { %320 = vst [vmem:[#allocation1 + $0x30] ss:$2 sm:$0xff] %v303_v5  ;;  %v371_v19 = vld [vmem:[%s262_s24 + $0x10] sm:$0xff]  ;;  %v372_v24 = vld [vmem:[%s262_s24 + $0x18] sm:$0xff]  ;;  %s441_s9 = sshll.u32 %s438_s11, 4  ;;  %s425_s7 = scalar_lea.sflag [#allocation4], %s993_s14  ;;  %s442_s9 = int_to_ptr.hbm [resolvable:$true] %s441_s9 }
  0x32   : > { %365 = vst [vmem:[%s1011_s18] sm:$0xf0] %v361_v9  ;;  %s789_s19 = sshra.s32 %s442_s9, 4  ;;  %s795_s23 = scalar_lea.hbm %s1080_s3, 64  ;;  %s790_s19 = int_to_ptr.hbm [resolvable:$true] %s789_s19 }
  0x33   : > { %367 = vst [vmem:[%s1011_s18 + $0x10] sm:$0xf] %v361_v9  ;;  %s791_s21 = scalar_lea.hbm %s790_s19, 32  ;;  %p796_p7 = scmp.lt.s32.totalorder %s790_s19, %s1080_s3 }
  0x34   : > { %v684_v1 = vpop.eup %683  ;;  %366 = vst [vmem:[%s1011_s18 + $0x8] sm:$0xf0] %v362_v11  ;;  %p792_p4 = scmp.ne.s32.totalorder %s790_s19, %s791_s21  ;;  %p797_p8 = scmp.lt.s32.totalorder %s795_s23, %s791_s21 }
  0x35   : > { %v347_v6 = vmul.f32 4.0, %v684_v1  ;;  %v309_v15 = vld.sshfl [vmem:[#allocation1] sm:$0xff pattern:$0x75316420]  ;;  %vm351_vm1 = vweird.f32 %v684_v1  ;;  %368 = vst [vmem:[%s1011_s18 + $0x18] sm:$0xf] %v362_v11 }
  0x36   : > { %v310_v16 = vld.sshfl [vmem:[#allocation1 + $0x8] sm:$0xff pattern:$0x75316420]  ;;  %v332_v17 = vsel %vm331_vm0, %v309_v15, 0.0  ;;  %p793_p5 = pnand %p792_p4, %p944_p9  ;;  %p798_p10 = por %p797_p8, %p796_p7 }
  0x37   : > { %v348_v8 = vsub.f32 1.0, %v347_v6  ;;  %v339_v18 = vsel %vm331_vm0, %v310_v16, 0.0  ;;  %377 = vst [vmem:[#allocation1] ss:$2 sm:$0xff] %v369_v12 }
  0x38   : > { %v313_v20 = vld.sshfl [vmem:[#allocation1 + $0x10] sm:$0xff pattern:$0x75316420]  ;;  %v314_v21 = vld.sshfl [vmem:[#allocation1 + $0x18] sm:$0xff pattern:$0x75316420]  ;;  %p794_p6 = pneg %p793_p5 }
  0x39   : > { %v349_v14 = vmul.f32 %v684_v1, %v348_v8  ;;  %v333_v22 = vsel %vm331_vm0, %v313_v20, 0.0  ;;  %v340_v23 = vsel %vm331_vm0, %v314_v21, 0.0  ;;  %381 = vst [vmem:[#allocation1 + $0x10] ss:$2 sm:$0xff] %v370_v13 }
  0x3a   : > { %v334_v26 = vadd.f32 %v333_v22, %v332_v17  ;;  %v341_v27 = vadd.f32 %v340_v23, %v339_v18  ;;  %v317_v28 = vld.sshfl [vmem:[#allocation1 + $0x20] sm:$0xff pattern:$0x75316420]  ;;  %v318_v29 = vld.sshfl [vmem:[#allocation1 + $0x28] sm:$0xff pattern:$0x75316420]  ;;  %p799_p13 = pnand %p798_p10, %p794_p6 }
  0x3b   : > { %v350_v25 = vadd.f32 %v684_v1, %v349_v14  ;;  %v335_v30 = vsel %vm331_vm0, %v317_v28, 0.0  ;;  %v342_v31 = vsel %vm331_vm0, %v318_v29, 0.0  ;;  %385 = vst [vmem:[#allocation1 + $0x20] ss:$2 sm:$0xff] %v371_v19 }
  0x3c   : > { %v336_v32 = vadd.f32 %v335_v30, %v334_v26  ;;  %v343_v33 = vadd.f32 %v342_v31, %v341_v27  ;;  %v321_v34 = vld.sshfl [vmem:[#allocation1 + $0x30] sm:$0xff pattern:$0x75316420]  ;;  %v322_v35 = vld.sshfl [vmem:[#allocation1 + $0x38] sm:$0xff pattern:$0x75316420] }
  0x3d   : > { %v337_v36 = vsel %vm331_vm0, %v321_v34, 0.0  ;;  %v344_v37 = vsel %vm331_vm0, %v322_v35, 0.0  ;;  %389 = vst [vmem:[#allocation1 + $0x30] ss:$2 sm:$0xff] %v372_v24  ;;  %v352_v38 = vsel %vm351_vm1, %v684_v1, %v350_v25 }
  0x3e   : > { %v338_v39 = vadd.f32 %v337_v36, %v336_v32  ;;  %v345_v40 = vadd.f32 %v344_v37, %v343_v33  ;;  %v378_v41 = vld.sshfl [vmem:[#allocation1] sm:$0xff pattern:$0x75316420]  ;;  %v379_v43 = vld.sshfl [vmem:[#allocation1 + $0x8] sm:$0xff pattern:$0x75316420] }
  0x3f   : > { %v400_v42 = vsel %vm331_vm0, %v378_v41, 0.0  ;;  %v407_v49 = vsel %vm331_vm0, %v379_v43, 0.0 }
  0x40   : > { %v353_v44 = vmul.f32 %v352_v38, %v338_v39  ;;  %v354_v45 = vmul.f32 %v352_v38, %v345_v40  ;;  %v382_v46 = vld.sshfl [vmem:[#allocation1 + $0x10] sm:$0xff pattern:$0x75316420]  ;;  %v383_v47 = vld.sshfl [vmem:[#allocation1 + $0x18] sm:$0xff pattern:$0x75316420] }
  0x41   : > { %v401_v48 = vsel %vm331_vm0, %v382_v46, 0.0  ;;  %v408_v50 = vsel %vm331_vm0, %v383_v47, 0.0 }
  0x42   : > { %355 = vst [vmem:[%s1011_s18] sm:$0xf] %v353_v44  ;;  %v386_v51 = vld.sshfl [vmem:[#allocation1 + $0x20] sm:$0xff pattern:$0x75316420]  ;;  %v402_v52 = vadd.f32 %v401_v48, %v400_v42  ;;  %v409_v53 = vadd.f32 %v408_v50, %v407_v49 }
  0x43   : > { %356 = vst [vmem:[%s1011_s18 + $0x8] sm:$0xf] %v354_v45  ;;  %v403_v54 = vsel %vm331_vm0, %v386_v51, 0.0  ;;  %v387_v55 = vld.sshfl [vmem:[#allocation1 + $0x28] sm:$0xff pattern:$0x75316420] }
  0x44   : > { %v390_v56 = vld.sshfl [vmem:[#allocation1 + $0x30] sm:$0xff pattern:$0x75316420]  ;;  %v404_v57 = vadd.f32 %v403_v54, %v402_v52  ;;  %v391_v58 = vld.sshfl [vmem:[#allocation1 + $0x38] sm:$0xff pattern:$0x75316420] }
  0x45   : > { %v405_v59 = vsel %vm331_vm0, %v390_v56, 0.0  ;;  %v410_v60 = vsel %vm331_vm0, %v387_v55, 0.0  ;;  %v412_v61 = vsel %vm331_vm0, %v391_v58, 0.0 }
  0x46   : > { %v406_v62 = vadd.f32 %v405_v59, %v404_v57  ;;  %v411_v63 = vadd.f32 %v410_v60, %v409_v53 }
  0x48   : > { %v414_v0 = vmul.f32 %v406_v62, %v352_v38  ;;  %v413_v1 = vadd.f32 %v412_v61, %v411_v63 }
  0x4a   : > { %v418_v2 = vrot.slane %v414_v0, 4  ;;  %v415_v3 = vmul.f32 %v413_v1, %v352_v38 }
  0x4c   : > { %422 = vst [vmem:[%s1011_s18 + $0x10] sm:$0xf0] %v418_v2  ;;  %v419_v4 = vrot.slane %v415_v3, 4 }
  0x4e   : > { %423 = vst [vmem:[%s1011_s18 + $0x18] sm:$0xf0] %v419_v4 }
  0x4f   : > { %802 = shalt.err (!%p799_p13)
}
  0x50   : > { %s867_s14 = smov 256   ;;  %s868_s4 = smov 16  }
  0x51   : > { %611 = dma.vmem_to_hbm [thread:$0]  (%p944_p9), %s440_s8, 512, %s442_s9, %s425_s7, %s867_s14, %s867_s14, %s868_s4  }
  0x52 PF: > { %s456_s16 = sand.u32 1, %s841_s12   ;;  %p624_p0 = pnand %p581_p12, %p951_p11 }
  0x53   : > { %s457_s28 = scalar_lea.sflag [#allocation4], %s456_s16 }
  0x54   : > { %p625_p1 = pneg %p624_p0 }
  0x56   : > { %836 = dma.done.wait (%p625_p1), %s457_s28, 512  }
  0x57   : > { %838 = vsyncadd (%p625_p1), %s457_s28, 4294966784  ;;  %s22_s17 = sadd.s32 1, %s861_s17   ;;  %s1093_s5 = sld [smem:[#allocation12_spill]] }
  0x58   : > { %p19_p2 = scmp.ge.s32.totalorder %s22_s17, 4   ;;  %s1094_s14 = sld [smem:[#allocation15_spill]] }
  0x59   : > { %s1095_s15 = sld [smem:[#allocation13_spill]]  ;;  %s1097_s12 = smov %s845_s13 }
  0x5a   : > { %s1096_s16 = sld [smem:[#allocation14_spill]]  ;;  %21 = sbr.rel (!%p19_p2) target bundleno = 8 (0x8), region = 107 }
  0x5d   : > { %s1098_s13 = smov %s1093_s5 }
  0x5f   :  { %463 = vsyncpa [#allocation3], 1 }
  0x60   :  { %465 = vsyncpa [#allocation3 + $0x1], 1 }
  0x61   :  { %466 = vsyncpa [#allocation6], 1 }
  0x62   :  { %468 = vsyncpa [#allocation6 + $0x1], 1 }
  0x63   :  { %469 = vsyncpa [#allocation4], 1 }
  0x64   :  { %471 = vsyncpa [#allocation4 + $0x1], 1 }

</bundles_post_ra>
